<compile_context>
chip_gen: v7x
topology: tpu7x:2x2x1
jax: 0.10.0
libtpu: 0.0.40
codegen_flags: <defaults>
</compile_context>

<pallas_src>
import jax
import jax.numpy as jnp
from jax.experimental import pallas as pl
from jax.experimental.pallas import tpu as pltpu


def _round_up(x, m):
    return ((x + m - 1) // m) * m


def _cdiv(a, b):
    return (a + b - 1) // b


def _pad_to(a, shape):
    pads = [(0, t - s) for s, t in zip(a.shape, shape)]
    if all(p == (0, 0) for p in pads):
        return a
    return jnp.pad(a, pads)


def mlp_kernel(x_ref, w1_ref, s1_ref, b1_ref, w2_ref, b2_ref, o_ref):
    # x:  [TM, Hp] f32 or bf16      w1: [Hp, Hp] bf16  (W1^T, un-scaled)
    # s1: [1, Hp]  f32 (BN scale)   b1: [1, Hp]  f32   (bias + BN mean/beta folded)
    # w2: [Hp, O]  bf16 (W2^T)      b2: [1, O]   f32   o: [TM, O] f32
    x = x_ref[...].astype(jnp.bfloat16)          # in-kernel cast (VPU, hidden under MXU/DMA)
    # Linear1 on MXU, f32 accumulation; BN scale applied to the f32 accumulator,
    # then folded bias + ReLU on the VPU.
    h = jnp.dot(x, w1_ref[...], preferred_element_type=jnp.float32)
    h = jnp.maximum(h * s1_ref[...] + b1_ref[...], 0.0)
    # Dropout(p=0.5) is the identity in eval mode.
    # Linear2 on MXU, f32 accumulation; output lanes kept unpadded (small-O DMA win).
    o_ref[...] = jnp.dot(h.astype(jnp.bfloat16), w2_ref[...],
                         preferred_element_type=jnp.float32) + b2_ref[...]


def prepare_params(w1, b1, gamma, beta, run_mean, run_var, w2, b2, eps=1e-5):
    """Fold BatchNorm and lay out / pad / cast the weights ONCE (hoisted out of
    the per-call path).  PyTorch layouts: w1 [H,H], b1 [H], w2 [O,H], b2 [O]."""
    H = w1.shape[0]
    O = w2.shape[0]
    Hp = _round_up(max(H, 128), 128)             # lane-align contraction dim

    inv_std = 1.0 / jnp.sqrt(jnp.asarray(run_var, jnp.float32) + eps)
    bn_scale = jnp.asarray(gamma, jnp.float32) * inv_std                       # [H]
    bn_bias = jnp.asarray(beta, jnp.float32) - jnp.asarray(run_mean, jnp.float32) * bn_scale
    b1_fold = jnp.asarray(b1, jnp.float32) * bn_scale + bn_bias                # [H]

    w1_p = _pad_to(jnp.asarray(w1, jnp.float32).T, (Hp, Hp)).astype(jnp.bfloat16)
    s1_p = _pad_to(bn_scale.reshape(1, H), (1, Hp))                            # f32
    b1_p = _pad_to(b1_fold.reshape(1, H), (1, Hp))                             # f32
    w2_p = _pad_to(jnp.asarray(w2, jnp.float32).T, (Hp, O)).astype(jnp.bfloat16)
    b2_p = jnp.asarray(b2, jnp.float32).reshape(1, O)                          # f32
    return dict(H=H, O=O, Hp=Hp, w1=w1_p, s1=s1_p, b1=b1_p, w2=w2_p, b2=b2_p)


def _pick_tm(N, tm_max=512):
    """Divisor-aware batch tile: multiple of 8, minimizes padding, and keeps
    >=2 grid steps when N allows it (so v7x's two TensorCores both get work)."""
    n_steps = max(_cdiv(N, tm_max), 2 if N >= 16 else 1)
    return _round_up(_cdiv(N, n_steps), 8)


def mlp_forward_prepared(x, params, tm_max=512):
    N, H = x.shape
    assert H == params["H"], "hidden dim mismatch"
    Hp, O = params["Hp"], params["O"]

    tm = _pick_tm(N, tm_max)
    Np = _round_up(N, tm)

    if Hp == H and Np == N:
        x_in = x                                  # no wrapper pad/copy; cast in-kernel
        x_bytes = jnp.dtype(x.dtype).itemsize
    else:
        # cast to bf16 BEFORE padding so the wrapper pad copy is half-width
        x_in = _pad_to(jnp.asarray(x, jnp.bfloat16), (Np, Hp))
        x_bytes = 2

    grid = (Np // tm,)

    # Explicit, auditable VMEM budget:
    #   double-buffered x / out tiles, single-buffered resident weights/biases,
    #   plus the f32 `h` intermediate and its bf16 cast copy.
    budget = (2 * tm * Hp * x_bytes              # x tiles (2 buffers)
              + 2 * tm * O * 4                   # out tiles (2 buffers, f32)
              + Hp * Hp * 2 + Hp * O * 2         # W1^T, W2^T (bf16, single-buffered)
              + (2 * Hp + O) * 4                 # bn scale, b1', b2 (f32)
              + tm * Hp * (4 + 2))               # f32 `h` + bf16 cast
    vmem_limit = int(min(max(2 * budget, 2 << 20), 60 << 20))

    x_spec = pl.BlockSpec((tm, Hp), lambda i: (i, 0))        # batch-tiled, pipelined
    out_spec = pl.BlockSpec((tm, O), lambda i: (i, 0))

    def build_in_specs(single_buffer_weights):
        if single_buffer_weights:
            resident = lambda shape: pl.BlockSpec(
                shape, lambda i: (0, 0), pipeline_mode=pl.Buffered(1))
        else:
            resident = lambda shape: pl.BlockSpec(shape, lambda i: (0, 0))
        return [x_spec,
                resident((Hp, Hp)),    # W1^T bf16
                resident((1, Hp)),     # bn scale f32
                resident((1, Hp)),     # b1' f32
                resident((Hp, O)),     # W2^T bf16
                resident((1, O))]      # b2 f32

    def run(single_buffer_weights):
        return pl.pallas_call(
            mlp_kernel,
            out_shape=jax.ShapeDtypeStruct((Np, O), jnp.float32),
            grid=grid,
            in_specs=build_in_specs(single_buffer_weights),
            out_specs=out_spec,
            compiler_params=pltpu.CompilerParams(
                dimension_semantics=("parallel",),
                vmem_limit_bytes=vmem_limit,
            ),
        )(x_in, params["w1"], params["s1"], params["b1"], params["w2"], params["b2"])

    try:
        out = run(single_buffer_weights=True)
    except Exception:
        # Fallback if this Pallas build rejects Buffered(1) on a top-level call.
        out = run(single_buffer_weights=False)

    return out[:N]


def mlp_forward(x, w1, b1, gamma, beta, run_mean, run_var, w2, b2,
                eps=1e-5, tm_max=512):
    params = prepare_params(w1, b1, gamma, beta, run_mean, run_var, w2, b2, eps=eps)
    return mlp_forward_prepared(x, params, tm_max=tm_max)


def reference_forward(x, w1, b1, gamma, beta, run_mean, run_var, w2, b2, eps=1e-5):
    h = x @ w1.T + b1
    h = (h - run_mean) / jnp.sqrt(run_var + eps) * gamma + beta
    h = jnp.maximum(h, 0.0)
    return h @ w2.T + b2


if __name__ == "__main__":
    N, H, O = 8, 32, 8  # batch, hidden_channels, out_channels

    key = jax.random.PRNGKey(0)
    kx, k1, kb1, k2, kb2, km, kv = jax.random.split(key, 7)

    x = jax.random.normal(kx, (N, H), dtype=jnp.float32)

    # Synthetic parameters with nn.Linear / nn.BatchNorm1d shapes.
    w1 = jax.random.normal(k1, (H, H), dtype=jnp.float32) * 0.1
    b1 = jax.random.normal(kb1, (H,), dtype=jnp.float32) * 0.1
    w2 = jax.random.normal(k2, (O, H), dtype=jnp.float32) * 0.1
    b2 = jax.random.normal(kb2, (O,), dtype=jnp.float32) * 0.1
    gamma = jnp.ones((H,), jnp.float32)
    beta = jnp.zeros((H,), jnp.float32)
    run_mean = jax.random.normal(km, (H,), dtype=jnp.float32) * 0.05
    run_var = jnp.abs(jax.random.normal(kv, (H,), dtype=jnp.float32)) * 0.1 + 1.0

    # Weight prep is hoisted (done once); the kernel call is the per-inference path.
    params = prepare_params(w1, b1, gamma, beta, run_mean, run_var, w2, b2)
    out = mlp_forward_prepared(x, params)
    out = jax.block_until_ready(out)

    ref = reference_forward(x, w1, b1, gamma, beta, run_mean, run_var, w2, b2)
    assert out.shape == (N, O)
    # Activations/weights are bf16 on the MXU (f32 accumulation, f32 BN scale/bias).
    assert jnp.allclose(out, ref, atol=2e-2, rtol=2e-2), "mismatch vs reference"

    print("KERNEL_OK")
</pallas_src>

<mosaic_0001>
module attributes {stable_mosaic.version = 11 : i64} {
  func.func @mlp_kernel(%arg0: i32, %arg1: memref<8x128xbf16, #tpu.memory_space<vmem>>, %arg2: memref<128x128xbf16, #tpu.memory_space<vmem>>, %arg3: memref<1x128xf32, #tpu.memory_space<vmem>>, %arg4: memref<1x128xf32, #tpu.memory_space<vmem>>, %arg5: memref<128x8xbf16, #tpu.memory_space<vmem>>, %arg6: memref<1x8xf32, #tpu.memory_space<vmem>>, %arg7: memref<8x8xf32, #tpu.memory_space<vmem>>) attributes {dimension_semantics = [#tpu.dimension_semantics<parallel>], iteration_bounds = array<i64: 1>, scalar_prefetch = 0 : i64, scratch_operands = 0 : i64, tpu.core_type = #tpu.core_type<tc>, window_params = [{transform_indices = @transform_0, window_bounds = array<i64: 8, 128>}, {pipeline_mode = #tpu.pipeline_mode<synchronous>, transform_indices = @transform_1, window_bounds = array<i64: 128, 128>}, {pipeline_mode = #tpu.pipeline_mode<synchronous>, transform_indices = @transform_2, window_bounds = array<i64: 1, 128>}, {pipeline_mode = #tpu.pipeline_mode<synchronous>, transform_indices = @transform_3, window_bounds = array<i64: 1, 128>}, {pipeline_mode = #tpu.pipeline_mode<synchronous>, transform_indices = @transform_4, window_bounds = array<i64: 128, 8>}, {pipeline_mode = #tpu.pipeline_mode<synchronous>, transform_indices = @transform_5, window_bounds = array<i64: 1, 8>}, {transform_indices = @transform_6, window_bounds = array<i64: 8, 8>}]} {
    %c0 = arith.constant 0 : index
    %c0_0 = arith.constant 0 : index
    %0 = vector.load %arg1[%c0, %c0_0] : memref<8x128xbf16, #tpu.memory_space<vmem>>, vector<8x128xbf16>
    %c0_1 = arith.constant 0 : index
    %c0_2 = arith.constant 0 : index
    %1 = vector.load %arg2[%c0_1, %c0_2] : memref<128x128xbf16, #tpu.memory_space<vmem>>, vector<128x128xbf16>
    %cst = arith.constant dense<0.000000e+00> : vector<8x128xf32>
    %2 = tpu.matmul %0, %1, %cst {dimension_numbers = #tpu.dot_dimension_numbers<[1], [0], [0], [1], [0, 0, 1, 1], [], []>} : vector<8x128xbf16>, vector<128x128xbf16>, vector<8x128xf32> -> vector<8x128xf32>
    %c0_3 = arith.constant 0 : index
    %c0_4 = arith.constant 0 : index
    %3 = vector.load %arg3[%c0_3, %c0_4] : memref<1x128xf32, #tpu.memory_space<vmem>>, vector<1x128xf32>
    %4 = vector.broadcast %3 : vector<1x128xf32> to vector<8x128xf32>
    %5 = arith.mulf %2, %4 : vector<8x128xf32>
    %c0_5 = arith.constant 0 : index
    %c0_6 = arith.constant 0 : index
    %6 = vector.load %arg4[%c0_5, %c0_6] : memref<1x128xf32, #tpu.memory_space<vmem>>, vector<1x128xf32>
    %7 = vector.broadcast %6 : vector<1x128xf32> to vector<8x128xf32>
    %8 = arith.addf %5, %7 : vector<8x128xf32>
    %cst_7 = arith.constant 0.000000e+00 : f32
    %9 = vector.broadcast %cst_7 : f32 to vector<8x128xf32>
    %10 = arith.maximumf %8, %9 : vector<8x128xf32>
    %11 = arith.truncf %10 : vector<8x128xf32> to vector<8x128xbf16>
    %c0_8 = arith.constant 0 : index
    %c0_9 = arith.constant 0 : index
    %12 = vector.load %arg5[%c0_8, %c0_9] : memref<128x8xbf16, #tpu.memory_space<vmem>>, vector<128x8xbf16>
    %cst_10 = arith.constant dense<0.000000e+00> : vector<8x8xf32>
    %13 = tpu.matmul %11, %12, %cst_10 {dimension_numbers = #tpu.dot_dimension_numbers<[1], [0], [0], [1], [0, 0, 1, 1], [], []>} : vector<8x128xbf16>, vector<128x8xbf16>, vector<8x8xf32> -> vector<8x8xf32>
    %c0_11 = arith.constant 0 : index
    %c0_12 = arith.constant 0 : index
    %14 = vector.load %arg6[%c0_11, %c0_12] : memref<1x8xf32, #tpu.memory_space<vmem>>, vector<1x8xf32>
    %15 = vector.broadcast %14 : vector<1x8xf32> to vector<8x8xf32>
    %16 = arith.addf %13, %15 : vector<8x8xf32>
    %c0_13 = arith.constant 0 : index
    %c0_14 = arith.constant 0 : index
    %17 = vector.load %arg7[%c0_13, %c0_14] : memref<8x8xf32, #tpu.memory_space<vmem>>, vector<8x8xf32>
    tpu.vector_store %arg7[%c0_13, %c0_14], %16 {strides = array<i32>} : memref<8x8xf32, #tpu.memory_space<vmem>>, vector<8x8xf32>,
    return
  }
  func.func @transform_0(%arg0: i32) -> (i32, i32) {
    %c0_i32 = arith.constant 0 : i32
    %c0_i32_0 = arith.constant 0 : i32
    return %arg0, %c0_i32 : i32, i32
  }
  func.func @transform_1(%arg0: i32) -> (i32, i32) {
    %c0_i32 = arith.constant 0 : i32
    %c0_i32_0 = arith.constant 0 : i32
    %c0_i32_1 = arith.constant 0 : i32
    return %c0_i32, %c0_i32_0 : i32, i32
  }
  func.func @transform_2(%arg0: i32) -> (i32, i32) {
    %c0_i32 = arith.constant 0 : i32
    %c0_i32_0 = arith.constant 0 : i32
    %c0_i32_1 = arith.constant 0 : i32
    return %c0_i32, %c0_i32_0 : i32, i32
  }
  func.func @transform_3(%arg0: i32) -> (i32, i32) {
    %c0_i32 = arith.constant 0 : i32
    %c0_i32_0 = arith.constant 0 : i32
    %c0_i32_1 = arith.constant 0 : i32
    return %c0_i32, %c0_i32_0 : i32, i32
  }
  func.func @transform_4(%arg0: i32) -> (i32, i32) {
    %c0_i32 = arith.constant 0 : i32
    %c0_i32_0 = arith.constant 0 : i32
    %c0_i32_1 = arith.constant 0 : i32
    return %c0_i32, %c0_i32_0 : i32, i32
  }
  func.func @transform_5(%arg0: i32) -> (i32, i32) {
    %c0_i32 = arith.constant 0 : i32
    %c0_i32_0 = arith.constant 0 : i32
    %c0_i32_1 = arith.constant 0 : i32
    return %c0_i32, %c0_i32_0 : i32, i32
  }
  func.func @transform_6(%arg0: i32) -> (i32, i32) {
    %c0_i32 = arith.constant 0 : i32
    %c0_i32_0 = arith.constant 0 : i32
    return %arg0, %c0_i32 : i32, i32
  }
}

module attributes {stable_mosaic.version = 11 : i64} {
  func.func @mlp_kernel(%arg0: i32, %arg1: memref<8x128xbf16, #tpu.memory_space<vmem>>, %arg2: memref<128x128xbf16, #tpu.memory_space<vmem>>, %arg3: memref<1x128xf32, #tpu.memory_space<vmem>>, %arg4: memref<1x128xf32, #tpu.memory_space<vmem>>, %arg5: memref<128x8xbf16, #tpu.memory_space<vmem>>, %arg6: memref<1x8xf32, #tpu.memory_space<vmem>>, %arg7: memref<8x8xf32, #tpu.memory_space<vmem>>) attributes {dimension_semantics = [#tpu.dimension_semantics<parallel>], iteration_bounds = array<i64: 1>, scalar_prefetch = 0 : i64, scratch_operands = 0 : i64, tpu.core_type = #tpu.core_type<tc>, window_params = [{transform_indices = @transform_0, window_bounds = array<i64: 8, 128>}, {pipeline_mode = #tpu.pipeline_mode<synchronous>, transform_indices = @transform_1, window_bounds = array<i64: 128, 128>}, {pipeline_mode = #tpu.pipeline_mode<synchronous>, transform_indices = @transform_2, window_bounds = array<i64: 1, 128>}, {pipeline_mode = #tpu.pipeline_mode<synchronous>, transform_indices = @transform_3, window_bounds = array<i64: 1, 128>}, {pipeline_mode = #tpu.pipeline_mode<synchronous>, transform_indices = @transform_4, window_bounds = array<i64: 128, 8>}, {pipeline_mode = #tpu.pipeline_mode<synchronous>, transform_indices = @transform_5, window_bounds = array<i64: 1, 8>}, {transform_indices = @transform_6, window_bounds = array<i64: 8, 8>}]} {
    %c0 = arith.constant 0 : index
    %c0_0 = arith.constant 0 : index
    %0 = vector.load %arg1[%c0, %c0_0] : memref<8x128xbf16, #tpu.memory_space<vmem>>, vector<8x128xbf16>
    %c0_1 = arith.constant 0 : index
    %c0_2 = arith.constant 0 : index
    %1 = vector.load %arg2[%c0_1, %c0_2] : memref<128x128xbf16, #tpu.memory_space<vmem>>, vector<128x128xbf16>
    %cst = arith.constant dense<0.000000e+00> : vector<8x128xf32>
    %2 = tpu.matmul %0, %1, %cst {dimension_numbers = #tpu.dot_dimension_numbers<[1], [0], [0], [1], [0, 0, 1, 1], [], []>} : vector<8x128xbf16>, vector<128x128xbf16>, vector<8x128xf32> -> vector<8x128xf32>
    %c0_3 = arith.constant 0 : index
    %c0_4 = arith.constant 0 : index
    %3 = vector.load %arg3[%c0_3, %c0_4] : memref<1x128xf32, #tpu.memory_space<vmem>>, vector<1x128xf32>
    %4 = vector.broadcast %3 : vector<1x128xf32> to vector<8x128xf32>
    %5 = arith.mulf %2, %4 : vector<8x128xf32>
    %c0_5 = arith.constant 0 : index
    %c0_6 = arith.constant 0 : index
    %6 = vector.load %arg4[%c0_5, %c0_6] : memref<1x128xf32, #tpu.memory_space<vmem>>, vector<1x128xf32>
    %7 = vector.broadcast %6 : vector<1x128xf32> to vector<8x128xf32>
    %8 = arith.addf %5, %7 : vector<8x128xf32>
    %cst_7 = arith.constant 0.000000e+00 : f32
    %9 = vector.broadcast %cst_7 : f32 to vector<8x128xf32>
    %10 = arith.maximumf %8, %9 : vector<8x128xf32>
    %11 = arith.truncf %10 : vector<8x128xf32> to vector<8x128xbf16>
    %c0_8 = arith.constant 0 : index
    %c0_9 = arith.constant 0 : index
    %12 = vector.load %arg5[%c0_8, %c0_9] : memref<128x8xbf16, #tpu.memory_space<vmem>>, vector<128x8xbf16>
    %cst_10 = arith.constant dense<0.000000e+00> : vector<8x8xf32>
    %13 = tpu.matmul %11, %12, %cst_10 {dimension_numbers = #tpu.dot_dimension_numbers<[1], [0], [0], [1], [0, 0, 1, 1], [], []>} : vector<8x128xbf16>, vector<128x8xbf16>, vector<8x8xf32> -> vector<8x8xf32>
    %c0_11 = arith.constant 0 : index
    %c0_12 = arith.constant 0 : index
    %14 = vector.load %arg6[%c0_11, %c0_12] : memref<1x8xf32, #tpu.memory_space<vmem>>, vector<1x8xf32>
    %15 = vector.broadcast %14 : vector<1x8xf32> to vector<8x8xf32>
    %16 = arith.addf %13, %15 : vector<8x8xf32>
    %c0_13 = arith.constant 0 : index
    %c0_14 = arith.constant 0 : index
    %17 = vector.load %arg7[%c0_13, %c0_14] : memref<8x8xf32, #tpu.memory_space<vmem>>, vector<8x8xf32>
    tpu.vector_store %arg7[%c0_13, %c0_14], %16 {strides = array<i32>} : memref<8x8xf32, #tpu.memory_space<vmem>>, vector<8x8xf32>,
    return
  }
  func.func @transform_0(%arg0: i32) -> (i32, i32) {
    %c0_i32 = arith.constant 0 : i32
    %c0_i32_0 = arith.constant 0 : i32
    return %arg0, %c0_i32 : i32, i32
  }
  func.func @transform_1(%arg0: i32) -> (i32, i32) {
    %c0_i32 = arith.constant 0 : i32
    %c0_i32_0 = arith.constant 0 : i32
    %c0_i32_1 = arith.constant 0 : i32
    return %c0_i32, %c0_i32_0 : i32, i32
  }
  func.func @transform_2(%arg0: i32) -> (i32, i32) {
    %c0_i32 = arith.constant 0 : i32
    %c0_i32_0 = arith.constant 0 : i32
    %c0_i32_1 = arith.constant 0 : i32
    return %c0_i32, %c0_i32_0 : i32, i32
  }
  func.func @transform_3(%arg0: i32) -> (i32, i32) {
    %c0_i32 = arith.constant 0 : i32
    %c0_i32_0 = arith.constant 0 : i32
    %c0_i32_1 = arith.constant 0 : i32
    return %c0_i32, %c0_i32_0 : i32, i32
  }
  func.func @transform_4(%arg0: i32) -> (i32, i32) {
    %c0_i32 = arith.constant 0 : i32
    %c0_i32_0 = arith.constant 0 : i32
    %c0_i32_1 = arith.constant 0 : i32
    return %c0_i32, %c0_i32_0 : i32, i32
  }
  func.func @transform_5(%arg0: i32) -> (i32, i32) {
    %c0_i32 = arith.constant 0 : i32
    %c0_i32_0 = arith.constant 0 : i32
    %c0_i32_1 = arith.constant 0 : i32
    return %c0_i32, %c0_i32_0 : i32, i32
  }
  func.func @transform_6(%arg0: i32) -> (i32, i32) {
    %c0_i32 = arith.constant 0 : i32
    %c0_i32_0 = arith.constant 0 : i32
    return %arg0, %c0_i32 : i32, i32
  }
}

</mosaic_0001>

<bundles_post_ra>
// kernel: tpu_custom_call.1
= control target key start
LH: loop header
LB: loop body
LE: loop exit
PB: predicated region body
PF: predicated region fallthrough
CT: control target
= control target key end

     0   :  { %v395_v1 = vmov 0.0   ;;  %vm396_vm0 = vmmov 0   ;;  %s505_s0 = inlined_call_operand.vmem [shape: bf16[8,128], index: 0, kind: input, shape index: {}]   ;;  %s506_s1 = inlined_call_operand.vmem [shape: bf16[128,128], index: 1, kind: input, shape index: {}]   ;;  %s507_s2 = inlined_call_operand.vmem [shape: f32[1,128], index: 2, kind: input, shape index: {}]   ;;  %s508_s3 = inlined_call_operand.vmem [shape: f32[1,128], index: 3, kind: input, shape index: {}]   ;;  %s509_s4 = inlined_call_operand.vmem [shape: bf16[128,8], index: 4, kind: input, shape index: {}]   ;;  %s510_s5 = inlined_call_operand.vmem [shape: f32[1,8], index: 5, kind: input, shape index: {}]   ;;  %s511_s6 = inlined_call_operand.hbm [shape: f32[8,8], index: 6, kind: output, shape index: {}]  }
   0x1   :  { %v355_v0 = vld [vmem:[%s506_s1] sm:$0xff]   ;;  %312 = vmatprep.subr.bf16.mxu0 %v395_v1  ;;  %332 = vmatprep.subr.bf16.mxu1 %v395_v1  ;;  %v356_v2 = vld [vmem:[%s506_s1 + $0x8] sm:$0xff]   ;;  %v357_v3 = vld [vmem:[%s506_s1 + $0x10] sm:$0xff]  }
   0x2   :  { %313 = vmatpush3.bf16.msra.mxu0 %v355_v0  ;;  %328 = vmatprep.mubr.msk.bf16.mxu0 %vm396_vm0, %v395_v1  ;;  %v363_v4 = vld [vmem:[%s509_s4] sm:$0xff]   ;;  %v358_v5 = vld [vmem:[%s506_s1 + $0x18] sm:$0xff]   ;;  %v364_v6 = vld [vmem:[%s509_s4 + $0x8] sm:$0xff]  }
   0x3   :  { %314 = vmatprep.subr.bf16.mxu0 %v395_v1  ;;  %348 = vmatprep.mubr.msk.bf16.mxu1 %vm396_vm0, %v395_v1  ;;  %v359_v7 = vld [vmem:[%s506_s1 + $0x20] sm:$0xff]   ;;  %v365_v8 = vld [vmem:[%s509_s4 + $0x10] sm:$0xff]  }
   0x4   :  { %333 = vmatpush3.bf16.msra.mxu1 %v363_v4 }
   0x5   :  { %334 = vmatprep.subr.bf16.mxu1 %v395_v1 }
   0x6   :  { %315 = vmatpush3.bf16.msra.mxu0 %v356_v2 }
   0x7   :  { %316 = vmatprep.subr.bf16.mxu0 %v395_v1 }
   0x8   :  { %335 = vmatpush3.bf16.msra.mxu1 %v364_v6 }
   0xa   :  { %317 = vmatpush3.bf16.msra.mxu0 %v357_v3 }
   0xb   :  { %318 = vmatprep.subr.bf16.mxu0 %v395_v1 }
   0xe   :  { %319 = vmatpush3.bf16.msra.mxu0 %v358_v5 }
   0xf   :  { %320 = vmatprep.subr.bf16.mxu0 %v395_v1 }
  0x10   :  { %11 = vsyncpa [#allocation3], 0  ;;  %336 = vmatprep.subr.bf16.mxu1 %v395_v1  ;;  %v360_v9 = vld [vmem:[%s506_s1 + $0x28] sm:$0xff]   ;;  %v366_v10 = vld [vmem:[%s509_s4 + $0x18] sm:$0xff]   ;;  %s397_s10 = smov [#allocation2]   ;;  %vm259_vm1 = vcmask 64512  }
  0x11   :  { %337 = vmatpush3.bf16.msra.mxu1 %v365_v8  ;;  %v361_v11 = vld [vmem:[%s506_s1 + $0x30] sm:$0xff]   ;;  %v367_v12 = vld [vmem:[%s509_s4 + $0x20] sm:$0xff]   ;;  %v362_v13 = vld [vmem:[%s506_s1 + $0x38] sm:$0xff]   ;;  %s267_s11 = sshll.u32 %s397_s10, 4  ;;  %s268_s11 = int_to_ptr.vmem [resolvable:$true] %s267_s11 }
  0x12   :  { %321 = vmatpush3.bf16.msra.mxu0 %v359_v7  ;;  %338 = vmatprep.subr.bf16.mxu1 %v395_v1  ;;  %v368_v14 = vld [vmem:[%s509_s4 + $0x28] sm:$0xff]   ;;  %v25_v15 = vld [vmem:[%s505_s0] sm:$0xf]  ;;  %v369_v16 = vld [vmem:[%s509_s4 + $0x30] sm:$0xff]   ;;  %p376_p1 = scmp.lt.s32.totalorder %s268_s11, %s268_s11 }
  0x13   :  { %322 = vmatprep.subr.bf16.mxu0 %v395_v1  ;;  %v370_v17 = vld [vmem:[%s509_s4 + $0x38] sm:$0xff]   ;;  %v283_v18 = vld [vmem:[%s507_s2] ss:$0 sm:$0xff]  ;;  %s371_s2 = scalar_lea.vmem %s268_s11, 128 }
  0x14   :  { %v284_v20 = vld [vmem:[%s508_s3] ss:$0 sm:$0xff]  ;;  %p372_p0 = scmp.ne.s32.totalorder %s268_s11, %s371_s2  ;;  %p377_p2 = scmp.lt.s32.totalorder %s371_s2, %s371_s2 }
  0x15   :  { %339 = vmatpush3.bf16.msra.mxu1 %v366_v10  ;;  %v285_v28 = vld [vmem:[%s510_s5] ss:$0 sm:$0xff] }
  0x16   :  { %323 = vmatpush3.bf16.msra.mxu0 %v360_v9  ;;  %340 = vmatprep.subr.bf16.mxu1 %v395_v1  ;;  %p378_p3 = por %p377_p2, %p376_p1 }
  0x17   :  { %324 = vmatprep.subr.bf16.mxu0 %v395_v1 }
  0x18   :  { %p379_p4 = pnand %p378_p3, %p372_p0 }
  0x19   :  { %341 = vmatpush3.bf16.msra.mxu1 %v367_v12 }
  0x1a   :  { %325 = vmatpush3.bf16.msra.mxu0 %v361_v11  ;;  %342 = vmatprep.subr.bf16.mxu1 %v395_v1 }
  0x1b   :  { %326 = vmatprep.subr.bf16.mxu0 %v395_v1 }
  0x1d   :  { %343 = vmatpush3.bf16.msra.mxu1 %v368_v14 }
  0x1e   :  { %327 = vmatpush3.bf16.msra.mxu0 %v362_v13  ;;  %344 = vmatprep.subr.bf16.mxu1 %v395_v1 }
  0x21   :  { %329 = vmatmul.mubr.bf16.vlgmr.msra.gmra.mrb[0].mxu0 %v25_v15  ;;  %345 = vmatpush3.bf16.msra.mxu1 %v369_v16 }
  0x22   :  { %346 = vmatprep.subr.bf16.mxu1 %v395_v1 }
  0x25   :  { %347 = vmatpush3.bf16.msra.mxu1 %v370_v17 }
  0xf4   :  { %v124_v19 = vpop.f32.mrb[0].mxu0 }
  0xf5   :  { %v137_v21 = vmul.f32 %v283_v18, %v124_v19  ;;  %v330_v22 = vpop.f32.mrb[1].mxu0 }
  0xf6   :  { %v127_v23 = vpop.f32.mrb[2].mxu0 }
  0xf7   :  { %v145_v24 = vadd.f32 %v284_v20, %v137_v21  ;;  %v331_v25 = vpop.f32.mrb[3].mxu0 }
  0xf9   :  { %v146_v26 = vmax.f32 %v145_v24, 0.0 }
  0xfb   :  { %v147_v27 = vpack.c.bf16 %v146_v26, %v146_v26 }
  0xfd   :  { %349 = vmatmul.mubr.bf16.vlgmr.msra.gmra.mrb[0].mxu1 %v147_v27 }
 0x1d0   :  { %v253_v29 = vpop.f32.mrb[0].mxu1 }
 0x1d1   :  { %v254_v30 = vadd.f32 %v285_v28, %v253_v29  ;;  %v350_v31 = vpop.f32.mrb[1].mxu1 }
 0x1d2   :  { %v256_v32 = vpop.f32.mrb[2].mxu1 }
 0x1d3   :  { %v351_v33 = vpop.f32.mrb[3].mxu1  ;;  %260 = vst.msk [vmem:[#allocation2] sm:$0xff] %vm259_vm1, %v254_v30 }
 0x1d4   :  { %382 = shalt.err (!%p379_p4)
}
 0x1d5   :  { %s383_s5 = scalar_lea.hbm %s511_s6, 128 }
 0x1d6   :  { %p384_p5 = scmp.ne.s32.totalorder %s511_s6, %s383_s5  ;;  %p387_p6 = scmp.lt.u32.totalorder %s383_s5, %s511_s6 }
 0x1d8   :  { %p389_p7 = pnand %p387_p6, %p384_p5 }
 0x1da   :  { %392 = shalt.err (!%p389_p7)
}
 0x1db   :  { %270 = dma.vmem_to_hbm [thread:$0]  %s268_s11, 128, %s511_s6, [#allocation3]  }
 0x1dc   :  { %393 = dma.done.wait [#allocation3], 128  }
 0x1dd   :  { %394 = vsyncadd [#allocation3], 4294967168 }
 0x1de   :  { %274 = vsyncpa [#allocation3], 1 }

// kernel: tpu_custom_call.1
= control target key start
LH: loop header
LB: loop body
LE: loop exit
PB: predicated region body
PF: predicated region fallthrough
CT: control target
= control target key end

     0   :  { %v395_v1 = vmov 0.0   ;;  %vm396_vm0 = vmmov 0   ;;  %s505_s0 = inlined_call_operand.vmem [shape: bf16[8,128], index: 0, kind: input, shape index: {}]   ;;  %s506_s1 = inlined_call_operand.vmem [shape: bf16[128,128], index: 1, kind: input, shape index: {}]   ;;  %s507_s2 = inlined_call_operand.vmem [shape: f32[1,128], index: 2, kind: input, shape index: {}]   ;;  %s508_s3 = inlined_call_operand.vmem [shape: f32[1,128], index: 3, kind: input, shape index: {}]   ;;  %s509_s4 = inlined_call_operand.vmem [shape: bf16[128,8], index: 4, kind: input, shape index: {}]   ;;  %s510_s5 = inlined_call_operand.vmem [shape: f32[1,8], index: 5, kind: input, shape index: {}]   ;;  %s511_s6 = inlined_call_operand.hbm [shape: f32[8,8], index: 6, kind: output, shape index: {}]  }
   0x1   :  { %v355_v0 = vld [vmem:[%s506_s1] sm:$0xff]   ;;  %312 = vmatprep.subr.bf16.mxu0 %v395_v1  ;;  %332 = vmatprep.subr.bf16.mxu1 %v395_v1  ;;  %v356_v2 = vld [vmem:[%s506_s1 + $0x8] sm:$0xff]   ;;  %v357_v3 = vld [vmem:[%s506_s1 + $0x10] sm:$0xff]  }
   0x2   :  { %313 = vmatpush3.bf16.msra.mxu0 %v355_v0  ;;  %328 = vmatprep.mubr.msk.bf16.mxu0 %vm396_vm0, %v395_v1  ;;  %v363_v4 = vld [vmem:[%s509_s4] sm:$0xff]   ;;  %v358_v5 = vld [vmem:[%s506_s1 + $0x18] sm:$0xff]   ;;  %v364_v6 = vld [vmem:[%s509_s4 + $0x8] sm:$0xff]  }
   0x3   :  { %314 = vmatprep.subr.bf16.mxu0 %v395_v1  ;;  %348 = vmatprep.mubr.msk.bf16.mxu1 %vm396_vm0, %v395_v1  ;;  %v359_v7 = vld [vmem:[%s506_s1 + $0x20] sm:$0xff]   ;;  %v365_v8 = vld [vmem:[%s509_s4 + $0x10] sm:$0xff]  }
   0x4   :  { %333 = vmatpush3.bf16.msra.mxu1 %v363_v4 }
   0x5   :  { %334 = vmatprep.subr.bf16.mxu1 %v395_v1 }
   0x6   :  { %315 = vmatpush3.bf16.msra.mxu0 %v356_v2 }
   0x7   :  { %316 = vmatprep.subr.bf16.mxu0 %v395_v1 }
   0x8   :  { %335 = vmatpush3.bf16.msra.mxu1 %v364_v6 }
   0xa   :  { %317 = vmatpush3.bf16.msra.mxu0 %v357_v3 }
   0xb   :  { %318 = vmatprep.subr.bf16.mxu0 %v395_v1 }
   0xe   :  { %319 = vmatpush3.bf16.msra.mxu0 %v358_v5 }
   0xf   :  { %320 = vmatprep.subr.bf16.mxu0 %v395_v1 }
  0x10   :  { %11 = vsyncpa [#allocation3], 0  ;;  %336 = vmatprep.subr.bf16.mxu1 %v395_v1  ;;  %v360_v9 = vld [vmem:[%s506_s1 + $0x28] sm:$0xff]   ;;  %v366_v10 = vld [vmem:[%s509_s4 + $0x18] sm:$0xff]   ;;  %s397_s10 = smov [#allocation2]   ;;  %vm259_vm1 = vcmask 64512  }
  0x11   :  { %337 = vmatpush3.bf16.msra.mxu1 %v365_v8  ;;  %v361_v11 = vld [vmem:[%s506_s1 + $0x30] sm:$0xff]   ;;  %v367_v12 = vld [vmem:[%s509_s4 + $0x20] sm:$0xff]   ;;  %v362_v13 = vld [vmem:[%s506_s1 + $0x38] sm:$0xff]   ;;  %s267_s11 = sshll.u32 %s397_s10, 4  ;;  %s268_s11 = int_to_ptr.vmem [resolvable:$true] %s267_s11 }
  0x12   :  { %321 = vmatpush3.bf16.msra.mxu0 %v359_v7  ;;  %338 = vmatprep.subr.bf16.mxu1 %v395_v1  ;;  %v368_v14 = vld [vmem:[%s509_s4 + $0x28] sm:$0xff]   ;;  %v25_v15 = vld [vmem:[%s505_s0] sm:$0xf]  ;;  %v369_v16 = vld [vmem:[%s509_s4 + $0x30] sm:$0xff]   ;;  %p376_p1 = scmp.lt.s32.totalorder %s268_s11, %s268_s11 }
  0x13   :  { %322 = vmatprep.subr.bf16.mxu0 %v395_v1  ;;  %v370_v17 = vld [vmem:[%s509_s4 + $0x38] sm:$0xff]   ;;  %v283_v18 = vld [vmem:[%s507_s2] ss:$0 sm:$0xff]  ;;  %s371_s2 = scalar_lea.vmem %s268_s11, 128 }
  0x14   :  { %v284_v20 = vld [vmem:[%s508_s3] ss:$0 sm:$0xff]  ;;  %p372_p0 = scmp.ne.s32.totalorder %s268_s11, %s371_s2  ;;  %p377_p2 = scmp.lt.s32.totalorder %s371_s2, %s371_s2 }
  0x15   :  { %339 = vmatpush3.bf16.msra.mxu1 %v366_v10  ;;  %v285_v28 = vld [vmem:[%s510_s5] ss:$0 sm:$0xff] }
  0x16   :  { %323 = vmatpush3.bf16.msra.mxu0 %v360_v9  ;;  %340 = vmatprep.subr.bf16.mxu1 %v395_v1  ;;  %p378_p3 = por %p377_p2, %p376_p1 }
  0x17   :  { %324 = vmatprep.subr.bf16.mxu0 %v395_v1 }
  0x18   :  { %p379_p4 = pnand %p378_p3, %p372_p0 }
  0x19   :  { %341 = vmatpush3.bf16.msra.mxu1 %v367_v12 }
  0x1a   :  { %325 = vmatpush3.bf16.msra.mxu0 %v361_v11  ;;  %342 = vmatprep.subr.bf16.mxu1 %v395_v1 }
  0x1b   :  { %326 = vmatprep.subr.bf16.mxu0 %v395_v1 }
  0x1d   :  { %343 = vmatpush3.bf16.msra.mxu1 %v368_v14 }
  0x1e   :  { %327 = vmatpush3.bf16.msra.mxu0 %v362_v13  ;;  %344 = vmatprep.subr.bf16.mxu1 %v395_v1 }
  0x21   :  { %329 = vmatmul.mubr.bf16.vlgmr.msra.gmra.mrb[0].mxu0 %v25_v15  ;;  %345 = vmatpush3.bf16.msra.mxu1 %v369_v16 }
  0x22   :  { %346 = vmatprep.subr.bf16.mxu1 %v395_v1 }
  0x25   :  { %347 = vmatpush3.bf16.msra.mxu1 %v370_v17 }
  0xf4   :  { %v124_v19 = vpop.f32.mrb[0].mxu0 }
  0xf5   :  { %v137_v21 = vmul.f32 %v283_v18, %v124_v19  ;;  %v330_v22 = vpop.f32.mrb[1].mxu0 }
  0xf6   :  { %v127_v23 = vpop.f32.mrb[2].mxu0 }
  0xf7   :  { %v145_v24 = vadd.f32 %v284_v20, %v137_v21  ;;  %v331_v25 = vpop.f32.mrb[3].mxu0 }
  0xf9   :  { %v146_v26 = vmax.f32 %v145_v24, 0.0 }
  0xfb   :  { %v147_v27 = vpack.c.bf16 %v146_v26, %v146_v26 }
  0xfd   :  { %349 = vmatmul.mubr.bf16.vlgmr.msra.gmra.mrb[0].mxu1 %v147_v27 }
 0x1d0   :  { %v253_v29 = vpop.f32.mrb[0].mxu1 }
 0x1d1   :  { %v254_v30 = vadd.f32 %v285_v28, %v253_v29  ;;  %v350_v31 = vpop.f32.mrb[1].mxu1 }
 0x1d2   :  { %v256_v32 = vpop.f32.mrb[2].mxu1 }
 0x1d3   :  { %v351_v33 = vpop.f32.mrb[3].mxu1  ;;  %260 = vst.msk [vmem:[#allocation2] sm:$0xff] %vm259_vm1, %v254_v30 }
 0x1d4   :  { %382 = shalt.err (!%p379_p4)
}
 0x1d5   :  { %s383_s5 = scalar_lea.hbm %s511_s6, 128 }
 0x1d6   :  { %p384_p5 = scmp.ne.s32.totalorder %s511_s6, %s383_s5  ;;  %p387_p6 = scmp.lt.u32.totalorder %s383_s5, %s511_s6 }
 0x1d8   :  { %p389_p7 = pnand %p387_p6, %p384_p5 }
 0x1da   :  { %392 = shalt.err (!%p389_p7)
}
 0x1db   :  { %270 = dma.vmem_to_hbm [thread:$0]  %s268_s11, 128, %s511_s6, [#allocation3]  }
 0x1dc   :  { %393 = dma.done.wait [#allocation3], 128  }
 0x1dd   :  { %394 = vsyncadd [#allocation3], 4294967168 }
 0x1de   :  { %274 = vsyncpa [#allocation3], 1 }

</bundles_post_ra>
